<compile_context>
chip_gen: v7x
topology: tpu7x:2x2x1
jax: 0.10.0
libtpu: 0.0.40
codegen_flags: <defaults>
</compile_context>

<pallas_src>
import jax
import jax.numpy as jnp
from jax.experimental import pallas as pl
from jax.experimental.pallas import tpu as pltpu

KSIZE = 3     # kernel_size
PADL = 128    # vreg-aligned staging offset for the in-register zero padding


def _pick_rows_per_step(n, c, seq_len, itemsize,
                        max_rows=8, vmem_budget=24 * 1024 * 1024):
    """Rows per grid step: fat steps, double-buffered footprint <= ~24 MiB,
    and >= 2 grid steps whenever N >= 2 (v7x has 2 TensorCores)."""
    row_bytes = c * seq_len * itemsize
    best = 1
    for d in range(1, min(n, max_rows) + 1):
        if n % d != 0:
            continue
        if 2 * 2 * d * row_bytes > vmem_budget:   # 2x (in+out) x 2x double-buffer
            continue
        if n // d >= 2:
            best = d
    return best


def _resblock_kernel(x_ref, w1_ref, b1_ref, w2_ref, b2_ref, out_ref, pad_ref):
    # x_ref  : (nb, C, L)       raw input rows (native dtype)
    # w*_ref : (3, C, C)        float32
    # b*_ref : (C, 1)           float32
    # out_ref: (nb, C, L)
    # pad_ref: (C, L + 2*PADL)  float32 VMEM staging buffer for zero padding
    nb = x_ref.shape[0]
    seq = x_ref.shape[2]

    # Zero the staging buffer once per step; only the two halo columns
    # (PADL-1 and PADL+seq) are ever read from the never-overwritten region,
    # and they must stay zero (== Conv1d's zero padding).
    pad_ref[...] = jnp.zeros(pad_ref.shape, jnp.float32)

    w1 = w1_ref[...]
    w2 = w2_ref[...]
    b1 = b1_ref[...]
    b2 = b2_ref[...]

    def conv3(v, w, b):
        # v: (C, seq) f32.  Stage v at a vreg-aligned lane offset inside the
        # zeroed scratch, then realign the +/-1 taps with static lane-window
        # slices (pure in-register shifts; the center tap uses v directly).
        # NOTE: folding the 3 taps into a single (C_out, 3*C_in) dot (v5e/v6e MRF
        # micro-win) would require a sublane-stacking copy, so the 3-dot form
        # with fp32 accumulation is kept.
        pad_ref[:, PADL:PADL + seq] = v
        vpad = pad_ref[...]
        acc = jnp.dot(w[1], v, preferred_element_type=jnp.float32)
        acc += jnp.dot(w[0], vpad[:, PADL - 1:PADL - 1 + seq],
                       preferred_element_type=jnp.float32)
        acc += jnp.dot(w[2], vpad[:, PADL + 1:PADL + 1 + seq],
                       preferred_element_type=jnp.float32)
        return acc + b

    for r in range(nb):                        # nb is static -> unrolled
        xr = x_ref[r].astype(jnp.float32)      # (C, seq); residual kept in f32
        h = jnp.tanh(conv3(xr, w1, b1))
        out_ref[r] = jnp.tanh(conv3(h, w2, b2) + xr).astype(out_ref.dtype)


def self_residual_block(x_ncl, w1, b1, w2, b2):
    """Forward of Self_residual_block (default flags).

    x_ncl : (N, C_in, L)        -- PyTorch Conv1d layout.
    w1,w2 : (C_out, C_in, K)    -- PyTorch Conv1d weight layout, K == 3.
    b1,b2 : (C_out,)
    returns (N, C_out, L), dtype of x.
    """
    N, C_in, L = x_ncl.shape
    C_out = w1.shape[0]
    assert C_in == C_out, "residual add needs in_channels == out_channels (no downsample)"
    assert w1.shape == (C_out, C_in, KSIZE) and w2.shape == (C_out, C_out, KSIZE)
    assert b1.shape == (C_out,) and b2.shape == (C_out,)

    nb = _pick_rows_per_step(N, C_in, L, x_ncl.dtype.itemsize)
    # TODO(synk): for extremely long rows (C*L*16 bytes per step > ~24 MiB) add a
    # halo'd sequence-tiling path; never hit for this module's channel counts.

    w1_k = jnp.transpose(w1, (2, 0, 1)).astype(jnp.float32)   # (K, C_out, C_in)
    w2_k = jnp.transpose(w2, (2, 0, 1)).astype(jnp.float32)
    b1_c = b1.reshape(C_out, 1).astype(jnp.float32)
    b2_c = b2.reshape(C_out, 1).astype(jnp.float32)

    cost = pl.CostEstimate(
        flops=2 * 2 * N * L * C_in * C_out * KSIZE,            # two k=3 convs
        transcendentals=2 * N * L * C_out,                     # two tanh layers
        bytes_accessed=N * C_in * L * x_ncl.dtype.itemsize
        + N * C_out * L * x_ncl.dtype.itemsize,
    )

    return pl.pallas_call(
        _resblock_kernel,
        out_shape=jax.ShapeDtypeStruct((N, C_out, L), x_ncl.dtype),
        grid=(N // nb,),
        in_specs=[
            pl.BlockSpec((nb, C_in, L), lambda i: (i, 0, 0)),
            pl.BlockSpec((KSIZE, C_out, C_in), lambda i: (0, 0, 0)),
            pl.BlockSpec((C_out, 1), lambda i: (0, 0)),
            pl.BlockSpec((KSIZE, C_out, C_out), lambda i: (0, 0, 0)),
            pl.BlockSpec((C_out, 1), lambda i: (0, 0)),
        ],
        out_specs=pl.BlockSpec((nb, C_out, L), lambda i: (i, 0, 0)),
        scratch_shapes=[pltpu.VMEM((C_out, L + 2 * PADL), jnp.float32)],
        compiler_params=pltpu.CompilerParams(
            dimension_semantics=("parallel",),      # every row-block independent
            vmem_limit_bytes=32 * 1024 * 1024,      # matches the 24 MiB block budget
        ),
        cost_estimate=cost,
    )(x_ncl, w1_k, b1_c, w2_k, b2_c)


# ---------- pure-JAX reference for validation ----------
def _conv1d_ref(x_ncl, w_oik, b):
    # x: (N, C_in, L); w: (C_out, C_in, K); stride 1, zero-pad 1 -> (N, C_out, L)
    L = x_ncl.shape[-1]
    xp = jnp.pad(x_ncl, ((0, 0), (0, 0), (1, 1)))
    out = sum(jnp.einsum("oi,nil->nol", w_oik[:, :, k], xp[:, :, k:k + L])
              for k in range(KSIZE))
    return out + b[None, :, None]


def _block_ref(x, w1, b1, w2, b2):
    h = jnp.tanh(_conv1d_ref(x, w1, b1))
    return jnp.tanh(_conv1d_ref(h, w2, b2) + x)


if __name__ == "__main__":
    key = jax.random.PRNGKey(0)
    kx, kw1, kb1, kw2, kb2, kx2 = jax.random.split(key, 6)

    # Small shapes consistent with the module: batch=2, channels=4, seq len=16.
    N, C, L = 2, 4, 16
    x = jax.random.normal(kx, (N, C, L), dtype=jnp.float32)
    scale = 1.0 / jnp.sqrt(jnp.float32(C * KSIZE))
    w1 = jax.random.normal(kw1, (C, C, KSIZE), jnp.float32) * scale
    b1 = jax.random.normal(kb1, (C,), jnp.float32) * scale
    w2 = jax.random.normal(kw2, (C, C, KSIZE), jnp.float32) * scale
    b2 = jax.random.normal(kb2, (C,), jnp.float32) * scale

    ref = _block_ref(x, w1, b1, w2, b2)
    out = jax.block_until_ready(self_residual_block(x, w1, b1, w2, b2))
    assert out.shape == (N, C, L)
    assert jnp.allclose(out, ref, atol=1e-3, rtol=1e-3), "small-shape mismatch"

    # Multi-row-per-step + non-128-multiple L: exercises the unrolled row loop,
    # the in-register boundary padding and the masked partial-width stores.
    N2, L2 = 4, 300
    x2 = jax.random.normal(kx2, (N2, C, L2), dtype=jnp.float32)
    ref2 = _block_ref(x2, w1, b1, w2, b2)
    out2 = jax.block_until_ready(self_residual_block(x2, w1, b1, w2, b2))
    assert out2.shape == (N2, C, L2)
    assert jnp.allclose(out2, ref2, atol=1e-3, rtol=1e-3), "multi-row path mismatch"

    # TODO(synk): BatchNorm / downsample / MultiheadAttention branches are disabled
    # by the module's default flags and are not implemented here.
    print("KERNEL_OK")
</pallas_src>

<mosaic_0001>
module attributes {stable_mosaic.version = 11 : i64} {
  func.func @_resblock_kernel(%arg0: i32, %arg1: memref<1x4x16xf32, #tpu.memory_space<vmem>>, %arg2: memref<3x4x4xf32, #tpu.memory_space<vmem>>, %arg3: memref<4x1xf32, #tpu.memory_space<vmem>>, %arg4: memref<3x4x4xf32, #tpu.memory_space<vmem>>, %arg5: memref<4x1xf32, #tpu.memory_space<vmem>>, %arg6: memref<1x4x16xf32, #tpu.memory_space<vmem>>, %arg7: memref<4x272xf32, #tpu.memory_space<vmem>>) attributes {dimension_semantics = [#tpu.dimension_semantics<parallel>], iteration_bounds = array<i64: 2>, scalar_prefetch = 0 : i64, scratch_operands = 1 : i64, tpu.core_type = #tpu.core_type<tc>, window_params = [{transform_indices = @transform_0, window_bounds = array<i64: 1, 4, 16>}, {pipeline_mode = #tpu.pipeline_mode<synchronous>, transform_indices = @transform_1, window_bounds = array<i64: 3, 4, 4>}, {pipeline_mode = #tpu.pipeline_mode<synchronous>, transform_indices = @transform_2, window_bounds = array<i64: 4, 1>}, {pipeline_mode = #tpu.pipeline_mode<synchronous>, transform_indices = @transform_3, window_bounds = array<i64: 3, 4, 4>}, {pipeline_mode = #tpu.pipeline_mode<synchronous>, transform_indices = @transform_4, window_bounds = array<i64: 4, 1>}, {transform_indices = @transform_5, window_bounds = array<i64: 1, 4, 16>}]} {
    %cst = arith.constant 0.000000e+00 : f32
    %0 = vector.broadcast %cst : f32 to vector<4x272xf32>
    %c0 = arith.constant 0 : index
    %c0_0 = arith.constant 0 : index
    %1 = vector.load %arg7[%c0, %c0_0] : memref<4x272xf32, #tpu.memory_space<vmem>>, vector<4x272xf32>
    tpu.vector_store %arg7[%c0, %c0_0], %0 {strides = array<i32>} : memref<4x272xf32, #tpu.memory_space<vmem>>, vector<4x272xf32>,
    %c0_1 = arith.constant 0 : index
    %c0_2 = arith.constant 0 : index
    %c0_3 = arith.constant 0 : index
    %2 = vector.load %arg2[%c0_1, %c0_2, %c0_3] : memref<3x4x4xf32, #tpu.memory_space<vmem>>, vector<3x4x4xf32>
    %c0_4 = arith.constant 0 : index
    %c0_5 = arith.constant 0 : index
    %c0_6 = arith.constant 0 : index
    %3 = vector.load %arg4[%c0_4, %c0_5, %c0_6] : memref<3x4x4xf32, #tpu.memory_space<vmem>>, vector<3x4x4xf32>
    %c0_7 = arith.constant 0 : index
    %c0_8 = arith.constant 0 : index
    %4 = vector.load %arg3[%c0_7, %c0_8] : memref<4x1xf32, #tpu.memory_space<vmem>>, vector<4x1xf32>
    %c0_9 = arith.constant 0 : index
    %c0_10 = arith.constant 0 : index
    %5 = vector.load %arg5[%c0_9, %c0_10] : memref<4x1xf32, #tpu.memory_space<vmem>>, vector<4x1xf32>
    %c0_11 = arith.constant 0 : index
    %c0_12 = arith.constant 0 : index
    %c0_13 = arith.constant 0 : index
    %6 = vector.load %arg1[%c0_11, %c0_12, %c0_13] : memref<1x4x16xf32, #tpu.memory_space<vmem>>, vector<1x4x16xf32>
    %7 = vector.shape_cast %6 : vector<1x4x16xf32> to vector<4x16xf32>
    %c0_14 = arith.constant 0 : index
    %c128 = arith.constant 128 : index
    %8 = vector.load %arg7[%c0_14, %c128] : memref<4x272xf32, #tpu.memory_space<vmem>>, vector<4x16xf32>
    tpu.vector_store %arg7[%c0_14, %c128], %7 {strides = array<i32>} : memref<4x272xf32, #tpu.memory_space<vmem>>, vector<4x16xf32>,
    %c0_15 = arith.constant 0 : index
    %c0_16 = arith.constant 0 : index
    %9 = vector.load %arg7[%c0_15, %c0_16] : memref<4x272xf32, #tpu.memory_space<vmem>>, vector<4x272xf32>
    %10 = vector.extract_strided_slice %2 {offsets = [1, 0, 0], sizes = [1, 4, 4], strides = [1, 1, 1]} : vector<3x4x4xf32> to vector<1x4x4xf32>
    %11 = vector.shape_cast %10 : vector<1x4x4xf32> to vector<4x4xf32>
    %cst_17 = arith.constant dense<0.000000e+00> : vector<4x16xf32>
    %12 = tpu.matmul %11, %7, %cst_17 {dimension_numbers = #tpu.dot_dimension_numbers<[1], [0], [0], [1], [0, 0, 1, 1], [], []>} : vector<4x4xf32>, vector<4x16xf32>, vector<4x16xf32> -> vector<4x16xf32>
    %13 = vector.extract_strided_slice %2 {offsets = [0, 0, 0], sizes = [1, 4, 4], strides = [1, 1, 1]} : vector<3x4x4xf32> to vector<1x4x4xf32>
    %14 = vector.shape_cast %13 : vector<1x4x4xf32> to vector<4x4xf32>
    %15 = vector.extract_strided_slice %9 {offsets = [0, 127], sizes = [4, 16], strides = [1, 1]} : vector<4x272xf32> to vector<4x16xf32>
    %cst_18 = arith.constant dense<0.000000e+00> : vector<4x16xf32>
    %16 = tpu.matmul %14, %15, %cst_18 {dimension_numbers = #tpu.dot_dimension_numbers<[1], [0], [0], [1], [0, 0, 1, 1], [], []>} : vector<4x4xf32>, vector<4x16xf32>, vector<4x16xf32> -> vector<4x16xf32>
    %17 = arith.addf %12, %16 : vector<4x16xf32>
    %18 = vector.extract_strided_slice %2 {offsets = [2, 0, 0], sizes = [1, 4, 4], strides = [1, 1, 1]} : vector<3x4x4xf32> to vector<1x4x4xf32>
    %19 = vector.shape_cast %18 : vector<1x4x4xf32> to vector<4x4xf32>
    %20 = vector.extract_strided_slice %9 {offsets = [0, 129], sizes = [4, 16], strides = [1, 1]} : vector<4x272xf32> to vector<4x16xf32>
    %cst_19 = arith.constant dense<0.000000e+00> : vector<4x16xf32>
    %21 = tpu.matmul %19, %20, %cst_19 {dimension_numbers = #tpu.dot_dimension_numbers<[1], [0], [0], [1], [0, 0, 1, 1], [], []>} : vector<4x4xf32>, vector<4x16xf32>, vector<4x16xf32> -> vector<4x16xf32>
    %22 = arith.addf %17, %21 : vector<4x16xf32>
    %23 = vector.broadcast %4 : vector<4x1xf32> to vector<4x16xf32>
    %24 = arith.addf %22, %23 : vector<4x16xf32>
    %25 = math.tanh %24 : vector<4x16xf32>
    %c0_20 = arith.constant 0 : index
    %c128_21 = arith.constant 128 : index
    %26 = vector.load %arg7[%c0_20, %c128_21] : memref<4x272xf32, #tpu.memory_space<vmem>>, vector<4x16xf32>
    tpu.vector_store %arg7[%c0_20, %c128_21], %25 {strides = array<i32>} : memref<4x272xf32, #tpu.memory_space<vmem>>, vector<4x16xf32>,
    %c0_22 = arith.constant 0 : index
    %c0_23 = arith.constant 0 : index
    %27 = vector.load %arg7[%c0_22, %c0_23] : memref<4x272xf32, #tpu.memory_space<vmem>>, vector<4x272xf32>
    %28 = vector.extract_strided_slice %3 {offsets = [1, 0, 0], sizes = [1, 4, 4], strides = [1, 1, 1]} : vector<3x4x4xf32> to vector<1x4x4xf32>
    %29 = vector.shape_cast %28 : vector<1x4x4xf32> to vector<4x4xf32>
    %cst_24 = arith.constant dense<0.000000e+00> : vector<4x16xf32>
    %30 = tpu.matmul %29, %25, %cst_24 {dimension_numbers = #tpu.dot_dimension_numbers<[1], [0], [0], [1], [0, 0, 1, 1], [], []>} : vector<4x4xf32>, vector<4x16xf32>, vector<4x16xf32> -> vector<4x16xf32>
    %31 = vector.extract_strided_slice %3 {offsets = [0, 0, 0], sizes = [1, 4, 4], strides = [1, 1, 1]} : vector<3x4x4xf32> to vector<1x4x4xf32>
    %32 = vector.shape_cast %31 : vector<1x4x4xf32> to vector<4x4xf32>
    %33 = vector.extract_strided_slice %27 {offsets = [0, 127], sizes = [4, 16], strides = [1, 1]} : vector<4x272xf32> to vector<4x16xf32>
    %cst_25 = arith.constant dense<0.000000e+00> : vector<4x16xf32>
    %34 = tpu.matmul %32, %33, %cst_25 {dimension_numbers = #tpu.dot_dimension_numbers<[1], [0], [0], [1], [0, 0, 1, 1], [], []>} : vector<4x4xf32>, vector<4x16xf32>, vector<4x16xf32> -> vector<4x16xf32>
    %35 = arith.addf %30, %34 : vector<4x16xf32>
    %36 = vector.extract_strided_slice %3 {offsets = [2, 0, 0], sizes = [1, 4, 4], strides = [1, 1, 1]} : vector<3x4x4xf32> to vector<1x4x4xf32>
    %37 = vector.shape_cast %36 : vector<1x4x4xf32> to vector<4x4xf32>
    %38 = vector.extract_strided_slice %27 {offsets = [0, 129], sizes = [4, 16], strides = [1, 1]} : vector<4x272xf32> to vector<4x16xf32>
    %cst_26 = arith.constant dense<0.000000e+00> : vector<4x16xf32>
    %39 = tpu.matmul %37, %38, %cst_26 {dimension_numbers = #tpu.dot_dimension_numbers<[1], [0], [0], [1], [0, 0, 1, 1], [], []>} : vector<4x4xf32>, vector<4x16xf32>, vector<4x16xf32> -> vector<4x16xf32>
    %40 = arith.addf %35, %39 : vector<4x16xf32>
    %41 = vector.broadcast %5 : vector<4x1xf32> to vector<4x16xf32>
    %42 = arith.addf %40, %41 : vector<4x16xf32>
    %43 = arith.addf %42, %7 : vector<4x16xf32>
    %44 = math.tanh %43 : vector<4x16xf32>
    %c0_27 = arith.constant 0 : index
    %c0_28 = arith.constant 0 : index
    %c0_29 = arith.constant 0 : index
    %45 = vector.load %arg6[%c0_27, %c0_28, %c0_29] : memref<1x4x16xf32, #tpu.memory_space<vmem>>, vector<1x4x16xf32>
    %46 = vector.shape_cast %45 : vector<1x4x16xf32> to vector<4x16xf32>
    %47 = vector.shape_cast %44 : vector<4x16xf32> to vector<1x4x16xf32>
    tpu.vector_store %arg6[%c0_27, %c0_28, %c0_29], %47 {strides = array<i32>} : memref<1x4x16xf32, #tpu.memory_space<vmem>>, vector<1x4x16xf32>,
    return
  }
  func.func @transform_0(%arg0: i32) -> (i32, i32, i32) {
    %c0_i32 = arith.constant 0 : i32
    %c0_i32_0 = arith.constant 0 : i32
    %c0_i32_1 = arith.constant 0 : i32
    return %arg0, %c0_i32, %c0_i32_0 : i32, i32, i32
  }
  func.func @transform_1(%arg0: i32) -> (i32, i32, i32) {
    %c0_i32 = arith.constant 0 : i32
    %c0_i32_0 = arith.constant 0 : i32
    %c0_i32_1 = arith.constant 0 : i32
    %c0_i32_2 = arith.constant 0 : i32
    return %c0_i32, %c0_i32_0, %c0_i32_1 : i32, i32, i32
  }
  func.func @transform_2(%arg0: i32) -> (i32, i32) {
    %c0_i32 = arith.constant 0 : i32
    %c0_i32_0 = arith.constant 0 : i32
    %c0_i32_1 = arith.constant 0 : i32
    return %c0_i32, %c0_i32_0 : i32, i32
  }
  func.func @transform_3(%arg0: i32) -> (i32, i32, i32) {
    %c0_i32 = arith.constant 0 : i32
    %c0_i32_0 = arith.constant 0 : i32
    %c0_i32_1 = arith.constant 0 : i32
    %c0_i32_2 = arith.constant 0 : i32
    return %c0_i32, %c0_i32_0, %c0_i32_1 : i32, i32, i32
  }
  func.func @transform_4(%arg0: i32) -> (i32, i32) {
    %c0_i32 = arith.constant 0 : i32
    %c0_i32_0 = arith.constant 0 : i32
    %c0_i32_1 = arith.constant 0 : i32
    return %c0_i32, %c0_i32_0 : i32, i32
  }
  func.func @transform_5(%arg0: i32) -> (i32, i32, i32) {
    %c0_i32 = arith.constant 0 : i32
    %c0_i32_0 = arith.constant 0 : i32
    %c0_i32_1 = arith.constant 0 : i32
    return %arg0, %c0_i32, %c0_i32_0 : i32, i32, i32
  }
}

</mosaic_0001>

<bundles_post_ra>
// kernel: tpu_custom_call.1
= control target key start
LH: loop header
LB: loop body
LE: loop exit
PB: predicated region body
PF: predicated region fallthrough
CT: control target
= control target key end

     0   :  { %10 = vsyncpa [#allocation4], 0  ;;  %s1428_s0 = inlined_call_operand.hbm [shape: f32[2,4,16], index: 0, kind: input, shape index: {}]   ;;  %s1429_s1 = inlined_call_operand.vmem [shape: f32[3,4,4], index: 1, kind: input, shape index: {}]   ;;  %s1430_s2 = inlined_call_operand.vmem [shape: f32[4,1], index: 2, kind: input, shape index: {}]   ;;  %s1431_s3 = inlined_call_operand.hbm [shape: f32[3,4,4], index: 3, kind: input, shape index: {}]   ;;  %s1432_s4 = inlined_call_operand.vmem [shape: f32[4,1], index: 4, kind: input, shape index: {}]   ;;  %s1433_s5 = inlined_call_operand.hbm [shape: f32[2,4,16], index: 5, kind: output, shape index: {}]  }
   0x1   :  { %12 = vsyncpa [#allocation4 + $0x1], 0 }
   0x2   :  { %13 = vsyncpa [#allocation7], 0 }
   0x3   :  { %14 = vsyncpa [#allocation5], 0 }
   0x4   :  { %16 = vsyncpa [#allocation5 + $0x1], 0  ;;  %s1166_s18 = smov 0   ;;  %s1168_s19 = smov 0  }
   0x5   :  { %s1170_s20 = smov 0   ;;  %s1172_s21 = smov 0  }
   0x6 LB: > { %s1187_s22 = sadd.s32 4294967295, %s1124_s21   ;;  %s856_s23 = sadd.s32 4294967294, %s1124_s21   ;;  %s1124_s21 = sphi %s1172_s21, %s1453_s21   ;;  %s1120_s20 = sphi %s1170_s20, %s1452_s20   ;;  %s1116_s19 = sphi %s1168_s19, %s1451_s19   ;;  %s1112_s18 = sphi %s1166_s18, %s1450_s18  }
   0x7   : > { %p42_p0 = scmp.ne.s32.totalorder %s1116_s19, %s1112_s18  ;;  %p1434_p1 = scmp.eq.s32.totalorder %s1187_s22, 0 }
   0x8   : > { %p156_p3 = scmp.eq.s32.totalorder %s856_s23, 1  ;;  %p857_p5 = scmp.ge.s32.totalorder %s1124_s21, 1 }
   0x9   : > { %p1196_p4 = por %p1434_p1, %p42_p0  ;;  %p163_p7 = scmp.lt.s32.totalorder %s1124_s21, 3 }
   0xa   : > { %p1201_p6 = por %p156_p3, %p42_p0  ;;  %s1126_s27 = smov [#allocation6]  }
   0xb   : > { %s1437_s24 = scalar_select %p1196_p4, 1, 0 }
   0xc   : > { %s1438_s25 = scalar_select %p1201_p6, 1, 0 }
   0xd   : > { %p1206_p8 = pnand %p857_p5, %p163_p7  ;;  %s181_s28 = sshll.u32 %s1126_s27, 4  ;;  %s1210_s28 = int_to_ptr.vmem [resolvable:$true] %s181_s28 }
   0xe   : > { %s1222_s30 = sadd.s32 1, %s1124_s21   ;;  %s29_s6 = sadd.s32 1, %s1120_s20 }
   0xf   : > { %s1439_s26 = scalar_select %p1206_p8, 1, 0 }
  0x10   : > { %p932_p9 = pneg %p1206_p8  ;;  %s26_s7 = ssub.s32 %s1124_s21, %s1222_s30 }
  0x11   : > { %s996_s10 = scalar_lea.hbm %s1431_s3, 192 }
  0x12   : > { %p1217_p11 = pnand %p932_p9, %p1434_p1  ;;  %p997_p12 = scmp.ne.s32.totalorder %s1431_s3, %s996_s10 }
  0x13   : > { %p1003_p5 = scmp.lt.u32.totalorder %s996_s10, %s1431_s3 }
  0x14   : > { %p998_p13 = pneg %p1217_p11 }
  0x16   : > { %p999_p0 = pnand %p998_p13, %p997_p12 }
  0x18   : > { %p1000_p3 = pneg %p999_p0 }
  0x1a   : > { %p1005_p7 = pnand %p1003_p5, %p1000_p3 }
  0x1c   : > { %1008 = shalt.err (!%p1005_p7)
}
  0x1d   : > { %s1009_s15 = scalar_lea.vmem %s1210_s28, 192  ;;  %p1017_p2 = scmp.lt.s32.totalorder %s1210_s28, %s1210_s28 }
  0x1e   : > { %p1010_p9 = scmp.ne.s32.totalorder %s1210_s28, %s1009_s15  ;;  %p1018_p6 = scmp.lt.s32.totalorder %s1009_s15, %s1009_s15 }
  0x20   : > { %p1012_p10 = pnand %p1010_p9, %p998_p13  ;;  %p1019_p4 = por %p1018_p6, %p1017_p2 }
  0x22   : > { %p1013_p1 = pneg %p1012_p10 }
  0x24   : > { %p1020_p8 = pnand %p1019_p4, %p1013_p1 }
  0x26   : > { %1023 = shalt.err (!%p1020_p8)
}
  0x27   : > { %s1127_s16 = smov 64   ;;  %s1128_s17 = smov 4  }
  0x28   : > { %935 = dma.hbm_to_vmem [thread:$0]  (!%p1217_p11), %s1431_s3, 192, %s1210_s28, [#allocation7], %s1127_s16, %s1127_s16, %s1128_s17  }
  0x29   : > { %p27_p2 = scmp.eq.s32.totalorder %s26_s7, 0  ;;  %p36_p1 = scmp.ne.s32.totalorder %s1120_s20, %s1116_s19 }
  0x2a   : > { %p37_p4 = scmp.eq.s32.totalorder %s1124_s21, 0  ;;  %p945_p6 = scmp.lt.s32.totalorder %s1124_s21, 2 }
  0x2b   : > { %s1253_s8 = scalar_select %p27_p2, %s1120_s20, %s29_s6  }
  0x2c   : > { %p38_p8 = por %p37_p4, %p36_p1  ;;  %p1441_p10 = scmp.eq.s32.totalorder %s1187_s22, 1 }
  0x2d   : > { %s198_s10 = sand.u32 1, %s1120_s20   ;;  %s861_s11 = sshll.u32 %s1124_s21, 6 }
  0x2e   : > { %p1257_p12 = por %p1441_p10, %p36_p1  ;;  %s860_s12 = sshll.u32 %s198_s10, 2 }
  0x2f   : > { %s1266_s14 = scalar_lea.hbm %s1428_s0, %s861_s11  ;;  %s202_s28 = scalar_lea.vmem [#allocation3], %s860_s12 }
  0x30   : > { %s209_s6 = sshll.u32 %s202_s28, 4  ;;  %p1268_p11 = pnand %p945_p6, %p38_p8  ;;  %s1272_s6 = int_to_ptr.vmem [resolvable:$true] %s209_s6 }
  0x31   : > { %s199_s15 = scalar_lea.sflag [#allocation4], %s198_s10  ;;  %s1024_s16 = scalar_lea.hbm %s1266_s14, 64 }
  0x32   : > { %p1025_p13 = scmp.ne.s32.totalorder %s1266_s14, %s1024_s16  ;;  %p1026_p0 = pneg %p1268_p11 }
  0x33   : > { %s1029_s27 = scalar_lea.hbm %s1428_s0, 128  ;;  %p1030_p7 = scmp.lt.u32.totalorder %s1266_s14, %s1428_s0 }
  0x34   : > { %p1027_p3 = pnand %p1026_p0, %p1025_p13  ;;  %p1031_p9 = scmp.lt.u32.totalorder %s1029_s27, %s1024_s16 }
  0x35   : > { %p1033_p1 = scmp.lt.u32.totalorder %s1024_s16, %s1266_s14 }
  0x36   : > { %p1028_p5 = pneg %p1027_p3  ;;  %p1032_p2 = por %p1031_p9, %p1030_p7 }
  0x38   : > { %p1034_p4 = por %p1033_p1, %p1032_p2 }
  0x3a   : > { %p1035_p6 = pnand %p1034_p4, %p1028_p5 }
  0x3c   : > { %1038 = shalt.err (!%p1035_p6)
}
  0x3d   : > { %s1039_s10 = scalar_lea.vmem %s1272_s6, 64  ;;  %s1129_s29 = smov [#allocation3]  }
  0x3e   : > { %p1040_p8 = scmp.ne.s32.totalorder %s1272_s6, %s1039_s10  ;;  %s1044_s13 = sshll.u32 %s1129_s29, 4  ;;  %s1045_s13 = int_to_ptr.vmem [resolvable:$false] %s1044_s13 }
  0x3f   : > { %s1046_s28 = scalar_lea.vmem %s1045_s13, 128  ;;  %p1047_p3 = scmp.lt.s32.totalorder %s1272_s6, %s1045_s13 }
  0x40   : > { %p1042_p10 = pnand %p1040_p8, %p1026_p0  ;;  %p1048_p7 = scmp.lt.s32.totalorder %s1046_s28, %s1039_s10 }
  0x42   : > { %p1043_p13 = pneg %p1042_p10  ;;  %p1049_p9 = por %p1048_p7, %p1047_p3 }
  0x44   : > { %p1050_p2 = pnand %p1049_p9, %p1043_p13 }
  0x46   : > { %1053 = shalt.err (!%p1050_p2)
}
  0x47   : > { %939 = dma.hbm_to_vmem [thread:$0]  (!%p1268_p11), %s1266_s14, 64, %s1272_s6, %s199_s15  }
  0x48   : > { %p1444_p5 = scmp.ne.s32.totalorder %s1439_s26, 0 }
  0x49   : > { %s1302_s16 = sand.u32 (!%p1444_p5), 1, %s1116_s19   ;;  %p1445_p0 = scmp.ne.s32.totalorder (!%p1444_p5), %s1437_s24, 0 }
  0x4a   : > { %218 = sbr.rel (%p1444_p5) target bundleno = 821 (0x335), region = 40  ;;  %s863_s17 = sshll.u32 (!%p1444_p5), %s1302_s16, 2 }
  0x4b   : > { %s221_s23 = scalar_lea.sflag (!%p1444_p5), [#allocation4], %s1302_s16  ;;  %s224_s27 = scalar_lea.vmem (!%p1444_p5), [#allocation3], %s863_s17 }
  0x51   : > { %1099 = dma.done.wait (%p1445_p0), %s221_s23, 64  }
  0x52   : > { %1101 = vsyncadd (%p1445_p0), %s221_s23, 4294967232  ;;  %p1446_p11 = scmp.eq.s32.totalorder %s1187_s22, 0 }
  0x54   : > { %1103 = dma.done.wait (%p1446_p11), [#allocation7], 192   ;;  %p1447_p1 = pmov %p1446_p11 }
  0x55   : > { %vm256_vm0 = vcmask 125952   ;;  %v1130_v0 = vmov 0.0   ;;  %v1319_v1 = vld [vmem:[%s224_s27] sm:$0xf]  ;;  %vm281_vm1 = vcmask 1043456   ;;  %vm1131_vm2 = vmmov 0  }
  0x56   : > { %1105 = vsyncadd (%p1447_p1), [#allocation7], 4294967104  ;;  %255 = vst [vmem:[#allocation2] sm:$0xff] %v1130_v0  ;;  %894 = vmatprep.subr.mxu0 %v1130_v0  ;;  %899 = vmatprep.subr.mxu1 %v1130_v0  ;;  %vm277_vm3 = vcmask 31744   ;;  %v259_v2 = vld [vmem:[%s1429_s1 + $0x4] sm:$0xf] }
  0x57   : > { %267 = vst.msk [vmem:[#allocation2 + $0x4] sm:$0xf] %vm256_vm0, %v1319_v1  ;;  %896 = vmatprep.mubr.msk.f32.mxu0 %vm1131_vm2, %v1130_v0  ;;  %900 = vmatpush3.msk.msra.mxu1 %vm281_vm1, %v1319_v1  ;;  %v1132_v3 = vmov 0   ;;  %s1133_s14 = smov 1   ;;  %s1134_s6 = smov 127   ;;  %vm275_vm4 = vcmask 7168  }
  0x58   : > { %901 = vmatprep.mubr.msk.f32.mxu1 %vm1131_vm2, %v1130_v0  ;;  %909 = vmatprep.subr.mxu1 %v1130_v0  ;;  %v264_v6 = vld [vmem:[%s1430_s2] sm:$0xf]  ;;  %v260_v12 = vld [vmem:[%s1429_s1 + $0x8] sm:$0xf]  ;;  %v262_v23 = vld [vmem:[#allocation6 + $0x4] sm:$0xf] }
  0x59   : > { %902 = vmatmul.mubr.msk.f32.vlgmr.msra.gmra.mrb[0].mxu1 %vm277_vm3, %v259_v2  ;;  %988 = vset.pattern.permute.xlu1 %v1132_v3  ;;  %v258_v9 = vld [vmem:[%s1429_s1] sm:$0xf]  ;;  %v261_v30 = vld [vmem:[#allocation6] sm:$0xf]  ;;  %v263_v33 = vld [vmem:[#allocation6 + $0x8] sm:$0xf] }
  0x5a   : > { %911 = vmatprep.mubr.msk.f32.mxu1 %vm1131_vm2, %v1130_v0  ;;  %989 = vset.pattern.permute.xlu0 %v1132_v3  ;;  %v265_v27 = vld [vmem:[%s1432_s4] sm:$0xf]  ;;  %s879_s23 = sshll.u32 %s1187_s22, 6  ;;  %s254_s27 = scalar_lea.vmem [#allocation8], %s863_s17 }
  0x5b   : > { %s776_s24 = sshll.u32 %s254_s27, 4  ;;  %s763_s7 = scalar_lea.sflag [#allocation5], %s1302_s16  ;;  %s1385_s24 = int_to_ptr.vmem [resolvable:$true] %s776_s24 }
  0x5c   : > { %s1054_s15 = scalar_lea.vmem %s1385_s24, 64  ;;  %s1135_s22 = smov [#allocation8]  }
  0x5d   : > { %p1055_p4 = scmp.ne.s32.totalorder %s1385_s24, %s1054_s15  ;;  %s1058_s17 = sshll.u32 %s1135_s22, 4  ;;  %s1059_s17 = int_to_ptr.vmem [resolvable:$false] %s1058_s17 }
  0x5e   : > { %v268_v4 = vld [vmem:[#allocation2] sm:$0xff]  ;;  %s1060_s11 = scalar_lea.vmem %s1059_s17, 128  ;;  %p1061_p10 = scmp.lt.s32.totalorder %s1385_s24, %s1059_s17 }
  0x5f   : > { %271 = vrot.lane.b32.xlu0 %v268_v4, %s1133_s14  ;;  %v270_v5 = vcombine.high %v268_v4, %v268_v4  ;;  %p1056_p6 = pnand %p1055_p4, %p1257_p12  ;;  %p1062_p13 = scmp.lt.s32.totalorder %s1060_s11, %s1054_s15 }
  0x61   : > { %430 = vrot.lane.b32.xlu1 %v270_v5, %s1134_s6  ;;  %p1057_p8 = pneg %p1056_p6  ;;  %p1063_p3 = por %p1062_p13, %p1061_p10 }
  0x63   : > { %273 = vrot.lane.b32.xlu0 %v270_v5, %s1133_s14  ;;  %p1064_p7 = pnand %p1063_p3, %p1057_p8 }
  0x65   : > { %510 = vperm.xlu1 %988, %v264_v6  }
  0xd1   : > { %v272_v7 = vpop.permute.xlu0 %271 }
  0xd3   : > { %v431_v11 = vpop.permute.xlu1 %430 }
  0xd5   : > { %v274_v8 = vpop.permute.xlu0 %273 }
  0xd6   : > { %v276_v10 = vsel %vm275_vm4, %v272_v7, %v274_v8 }
  0xd7   : > { %895 = vmatpush3.msk.msra.mxu0 %vm281_vm1, %v276_v10 }
  0xd8   : > { %897 = vmatmul.mubr.msk.f32.vlgmr.msra.gmra.mrb[0].mxu0 %vm277_vm3, %v258_v9  ;;  %904 = vmatprep.subr.mxu0 %v1130_v0 }
  0xd9   : > { %905 = vmatpush3.msk.msra.mxu0 %vm281_vm1, %v431_v11  ;;  %906 = vmatprep.mubr.msk.f32.mxu0 %vm1131_vm2, %v1130_v0 }
  0xda   : > { %914 = vmatprep.subr.mxu0 %v1130_v0 }
  0xdc   : > { %907 = vmatmul.mubr.msk.f32.vlgmr.msra.gmra.mrb[2].mxu0 %vm277_vm3, %v260_v12 }
  0xdd   : > { %916 = vmatprep.mubr.msk.f32.mxu0 %vm1131_vm2, %v1130_v0 }
  0xe4   : > { %v511_v19 = vpop.permute.xlu1 %510 }
 0x12c   : > { %v426_v13 = vpop.f32.mrb[0].mxu1 }
 0x12d   : > { %v903_v14 = vpop.f32.mrb[1].mxu1 }
 0x1ab   : > { %v350_v15 = vpop.f32.mrb[0].mxu0 }
 0x1ac   : > { %v427_v16 = vadd.f32 %v426_v13, %v350_v15  ;;  %v898_v17 = vpop.f32.mrb[1].mxu0 }
 0x1af   : > { %v503_v18 = vpop.f32.mrb[2].mxu0 }
 0x1b0   : > { %v507_v20 = vadd.f32 %v503_v18, %v427_v16  ;;  %v908_v21 = vpop.f32.mrb[3].mxu0 }
 0x1b2   : > { %v513_v22 = vadd.f32 %v511_v19, %v507_v20 }
 0x1b4   : > { %992 = vtanh.f32 %v513_v22 }
 0x1be   : > { %v993_v24 = vpop.eup %992 }
 0x1bf   : > { %515 = vst.msk [vmem:[#allocation2 + $0x4] sm:$0xf] %vm256_vm0, %v993_v24  ;;  %915 = vmatpush3.msk.msra.mxu0 %vm281_vm1, %v993_v24 }
 0x1c0   : > { %917 = vmatmul.mubr.msk.f32.vlgmr.msra.gmra.mrb[4].mxu0 %vm277_vm3, %v262_v23 }
 0x1c6   : > { %v516_v25 = vld [vmem:[#allocation2] sm:$0xff] }
 0x1c7   : > { %519 = vrot.lane.b32.xlu0 %v516_v25, %s1133_s14  ;;  %v518_v26 = vcombine.high %v516_v25, %v516_v25 }
 0x1c9   : > { %521 = vrot.lane.b32.xlu1 %v518_v26, %s1133_s14 }
 0x1cb   : > { %675 = vrot.lane.b32.xlu0 %v518_v26, %s1134_s6  ;;  %s1383_s6 = scalar_lea.hbm %s1433_s5, %s879_s23 }
 0x1cd   : > { %755 = vperm.xlu1 %988, %v265_v27  }
 0x239   : > { %v520_v28 = vpop.permute.xlu0 %519 }
 0x23b   : > { %v522_v29 = vpop.permute.xlu1 %521 }
 0x23c   : > { %v523_v31 = vsel %vm275_vm4, %v520_v28, %v522_v29 }
 0x23d   : > { %v676_v32 = vpop.permute.xlu0 %675  ;;  %910 = vmatpush3.msk.msra.mxu1 %vm281_vm1, %v523_v31 }
 0x23e   : > { %912 = vmatmul.mubr.msk.f32.vlgmr.msra.gmra.mrb[2].mxu1 %vm277_vm3, %v261_v30  ;;  %919 = vmatprep.subr.mxu1 %v1130_v0 }
 0x23f   : > { %920 = vmatpush3.msk.msra.mxu1 %vm281_vm1, %v676_v32  ;;  %921 = vmatprep.mubr.msk.f32.mxu1 %vm1131_vm2, %v1130_v0 }
 0x242   : > { %922 = vmatmul.mubr.msk.f32.vlgmr.msra.gmra.mrb[4].mxu1 %vm277_vm3, %v263_v33 }
 0x24c   : > { %v756_v42 = vpop.permute.xlu1 %755 }
 0x293   : > { %v671_v34 = vpop.f32.mrb[4].mxu0 }
 0x294   : > { %v918_v35 = vpop.f32.mrb[5].mxu0 }
 0x311   : > { %v595_v36 = vpop.f32.mrb[2].mxu1 }
 0x312   : > { %v672_v37 = vadd.f32 %v671_v34, %v595_v36  ;;  %v913_v38 = vpop.f32.mrb[3].mxu1 }
 0x315   : > { %v748_v39 = vpop.f32.mrb[4].mxu1 }
 0x316   : > { %v752_v40 = vadd.f32 %v748_v39, %v672_v37  ;;  %v923_v41 = vpop.f32.mrb[5].mxu1 }
 0x318   : > { %v758_v43 = vadd.f32 %v756_v42, %v752_v40 }
 0x31a   : > { %v759_v44 = vadd.f32 %v758_v43, %v1319_v1 }
 0x31c   : > { %994 = vtanh.f32 %v759_v44 }
 0x326   : > { %v995_v45 = vpop.eup %994 }
 0x327   : > { %761 = vst.msk [vmem:[%s254_s27] sm:$0xf] %vm256_vm0, %v995_v45 }
 0x328   : > { %1067 = shalt.err (!%p1064_p7)
}
 0x329   : > { %s1068_s16 = scalar_lea.hbm %s1383_s6, 64  ;;  %s1072_s29 = scalar_lea.hbm %s1433_s5, 128 }
 0x32a   : > { %p1069_p9 = scmp.ne.s32.totalorder %s1383_s6, %s1068_s16  ;;  %p1073_p0 = scmp.lt.u32.totalorder %s1383_s6, %s1433_s5 }
 0x32b   : > { %p1074_p11 = scmp.lt.u32.totalorder %s1072_s29, %s1068_s16  ;;  %p1076_p4 = scmp.lt.u32.totalorder %s1068_s16, %s1383_s6 }
 0x32c   : > { %p1070_p2 = pnand %p1069_p9, %p1257_p12 }
 0x32d   : > { %p1075_p1 = por %p1074_p11, %p1073_p0 }
 0x32e   : > { %p1071_p5 = pneg %p1070_p2 }
 0x32f   : > { %p1077_p6 = por %p1076_p4, %p1075_p1 }
 0x331   : > { %p1078_p8 = pnand %p1077_p6, %p1071_p5 }
 0x333   : > { %1081 = shalt.err (!%p1078_p8)
}
 0x334   : > { %930 = dma.vmem_to_hbm [thread:$0]  (%p1257_p12), %s1385_s24, 64, %s1383_s6, %s763_s7  }
 0x335 PF: > { %s788_s23 = sand.u32 1, %s1112_s18   ;;  %p1448_p10 = scmp.ne.s32.totalorder %s1438_s25, 0 }
 0x336   : > { %p1449_p13 = scmp.ge.s32.totalorder %s1124_s21, 2  ;;  %s789_s27 = scalar_lea.sflag [#allocation5], %s788_s23 }
 0x338   : > { %p941_p3 = pnand %p1449_p13, %p1448_p10 }
 0x33a   : > { %1107 = dma.done.wait (!%p941_p3), %s789_s27, 64  }
 0x33b   : > { %1109 = vsyncadd (!%p941_p3), %s789_s27, 4294967232  ;;  %p19_p7 = scmp.ge.s32.totalorder %s1222_s30, 4   ;;  %s1450_s18 = smov %s1116_s19 }
 0x33c   : > { %s1451_s19 = smov %s1120_s20  ;;  %s1452_s20 = smov %s1253_s8 }
 0x33d   : > { %s1453_s21 = smov %s1222_s30  ;;  %21 = sbr.rel (!%p19_p7) target bundleno = 6 (0x6), region = 89 }
 0x344   :  { %794 = vsyncpa [#allocation4], 1 }
 0x345   :  { %796 = vsyncpa [#allocation4 + $0x1], 1 }
 0x346   :  { %797 = vsyncpa [#allocation7], 1 }
 0x347   :  { %798 = vsyncpa [#allocation5], 1 }
 0x348   :  { %800 = vsyncpa [#allocation5 + $0x1], 1 }

</bundles_post_ra>
